<compile_context>
chip_gen: v7x
topology: tpu7x:2x2x1
jax: 0.10.0
libtpu: 0.0.40
codegen_flags: <defaults>
</compile_context>

<pallas_src>
import jax
import jax.numpy as jnp
from jax.experimental import pallas as pl
from jax.experimental.pallas import tpu as pltpu

ZERO_CLIP = 1e-6


def _membership_kernel(x_ref, wt_ref, b_ref, o_ref):
    # x_ref:  (TN, D, TW)   TN batch elements, one WH tile
    # wt_ref: (C, 2D)       rows of [a ; -2*a*c]^T, a = 1/(2*lamda^2)   (grid-invariant)
    # b_ref:  (C, 1)        sum_d c^2 * a                               (grid-invariant)
    # o_ref:  (TN, C, TW)
    wt = wt_ref[...]                          # (C, 2D)
    b = b_ref[...]                            # (C, 1)
    tn = x_ref.shape[0]
    for i in range(tn):                       # small static unroll over the batch tile
        x = x_ref[i]                          # (D, TW)
        xx = jnp.concatenate([x * x, x], axis=0)                         # (2D, TW)
        quad = jnp.dot(wt, xx, preferred_element_type=jnp.float32)       # (C, TW)
        # Exact exponent is <= 0; clamp so f32 cancellation can never yield out > 1.
        expo = jnp.minimum(-(quad + b), 0.0)
        o_ref[i] = jnp.maximum(jnp.exp(expo), ZERO_CLIP).astype(o_ref.dtype)


def _choose_tiles(N, D, C, WH, max_tn, max_tw, vmem_budget_bytes):
    # Lane tile: multiple of 128 that divides WH (or full WH when not 128-aligned).
    if WH % 128 == 0:
        tw = min(WH, max(128, max_tw - max_tw % 128))
        while WH % tw:
            tw -= 128
    else:
        tw = WH
    # Batch tile: amortize per-grid-step overhead while staying inside the VMEM budget
    # (double-buffered x input + output per batch element, f32).
    bytes_per_n = 2 * 4 * tw * (D + C)
    tn = 1
    for cand in range(min(N, max_tn), 0, -1):
        if N % cand == 0 and cand * bytes_per_n <= vmem_budget_bytes:
            tn = cand
            break
    return tn, tw


def membership_norm(x, c, lam, *, max_tn=8, max_tw=4096):
    """x: (N, D, WH) f32, c/lam: (D, C) f32  ->  (N, C, WH) f32."""
    N, D, WH = x.shape
    Dc, C = c.shape
    assert Dc == D and lam.shape == (D, C)

    # Hoisted grid-invariant parameter math (tiny (D, C) ops in XLA).
    a = 0.5 / (lam.astype(jnp.float32) * lam.astype(jnp.float32))   # (D, C)
    wt = jnp.concatenate([a, -2.0 * a * c], axis=0).T               # (C, 2D)
    b = jnp.sum(c * c * a, axis=0)[:, None]                         # (C, 1)

    tn, tw = _choose_tiles(N, D, C, WH, max_tn, max_tw,
                           vmem_budget_bytes=8 * 1024 * 1024)
    grid = (N // tn, WH // tw)

    return pl.pallas_call(
        _membership_kernel,
        out_shape=jax.ShapeDtypeStruct((N, C, WH), jnp.float32),
        grid_spec=pltpu.PrefetchScalarGridSpec(
            num_scalar_prefetch=0,
            grid=grid,
            in_specs=[
                pl.BlockSpec((tn, D, tw), lambda n, w: (n, 0, w)),
                pl.BlockSpec((C, 2 * D), lambda n, w: (0, 0)),
                pl.BlockSpec((C, 1), lambda n, w: (0, 0)),
            ],
            out_specs=pl.BlockSpec((tn, C, tw), lambda n, w: (n, 0, w)),
        ),
        compiler_params=pltpu.CompilerParams(
            dimension_semantics=("parallel", "parallel")),
    )(x, wt, b)


def membership_norm_ref(x, c, lam):
    # Pure-JAX reference matching the PyTorch expand/prod formulation.
    xe = x[:, :, None, :]                     # (N, D, 1, WH)
    ce = c[None, :, :, None]                  # (1, D, C, 1)
    le = lam[None, :, :, None]                # (1, D, C, 1)
    out = jnp.exp(-(xe - ce) ** 2 / (2.0 * le ** 2))
    out = jnp.prod(out, axis=1)               # (N, C, WH)
    return jnp.maximum(out, ZERO_CLIP)


if __name__ == "__main__":
    # Small shapes consistent with the module's forward: (N, D, WH), params (D, C).
    N, D, C, WH = 4, 8, 16, 256

    key = jax.random.PRNGKey(0)
    kx, kc, kl = jax.random.split(key, 3)

    x = jax.random.normal(kx, (N, D, WH), dtype=jnp.float32)
    # Deterministic, non-trivial parameter init (module defaults would be c=0, lamda=1).
    init_c = 0.2 * jax.random.normal(kc, (D, C), dtype=jnp.float32)
    init_lamda = 1.0 + 0.5 * jax.random.uniform(kl, (D, C), dtype=jnp.float32)

    # Lowered tile caps so this tiny test still exercises both grid axes (grid = (2, 2)).
    out = membership_norm(x, init_c, init_lamda, max_tn=2, max_tw=128)
    out = jax.block_until_ready(out)

    ref = membership_norm_ref(x, init_c, init_lamda)
    assert out.shape == (N, C, WH)
    assert jnp.allclose(out, ref, rtol=1e-4, atol=1e-5), "mismatch vs reference"

    print("KERNEL_OK")
</pallas_src>

<mosaic_0001>
module attributes {stable_mosaic.version = 11 : i64} {
  func.func @_membership_kernel(%arg0: i32, %arg1: i32, %arg2: memref<2x8x128xf32, #tpu.memory_space<vmem>>, %arg3: memref<16x16xf32, #tpu.memory_space<vmem>>, %arg4: memref<16x1xf32, #tpu.memory_space<vmem>>, %arg5: memref<2x16x128xf32, #tpu.memory_space<vmem>>) attributes {dimension_semantics = [#tpu.dimension_semantics<parallel>, #tpu.dimension_semantics<parallel>], iteration_bounds = array<i64: 2, 2>, scalar_prefetch = 0 : i64, scratch_operands = 0 : i64, tpu.core_type = #tpu.core_type<tc>, window_params = [{transform_indices = @transform_0, window_bounds = array<i64: 2, 8, 128>}, {pipeline_mode = #tpu.pipeline_mode<synchronous>, transform_indices = @transform_1, window_bounds = array<i64: 16, 16>}, {pipeline_mode = #tpu.pipeline_mode<synchronous>, transform_indices = @transform_2, window_bounds = array<i64: 16, 1>}, {transform_indices = @transform_3, window_bounds = array<i64: 2, 16, 128>}]} {
    %c0 = arith.constant 0 : index
    %c0_0 = arith.constant 0 : index
    %0 = vector.load %arg3[%c0, %c0_0] : memref<16x16xf32, #tpu.memory_space<vmem>>, vector<16x16xf32>
    %c0_1 = arith.constant 0 : index
    %c0_2 = arith.constant 0 : index
    %1 = vector.load %arg4[%c0_1, %c0_2] : memref<16x1xf32, #tpu.memory_space<vmem>>, vector<16x1xf32>
    %c0_3 = arith.constant 0 : index
    %c0_4 = arith.constant 0 : index
    %c0_5 = arith.constant 0 : index
    %2 = vector.load %arg2[%c0_3, %c0_4, %c0_5] : memref<2x8x128xf32, #tpu.memory_space<vmem>>, vector<1x8x128xf32>
    %3 = vector.shape_cast %2 : vector<1x8x128xf32> to vector<8x128xf32>
    %4 = arith.mulf %3, %3 : vector<8x128xf32>
    %5 = tpu.concatenate %4, %3 in 0 : vector<8x128xf32>, vector<8x128xf32> -> vector<16x128xf32>
    %cst = arith.constant dense<0.000000e+00> : vector<16x128xf32>
    %6 = tpu.matmul %0, %5, %cst {dimension_numbers = #tpu.dot_dimension_numbers<[1], [0], [0], [1], [0, 0, 1, 1], [], []>} : vector<16x16xf32>, vector<16x128xf32>, vector<16x128xf32> -> vector<16x128xf32>
    %7 = vector.broadcast %1 : vector<16x1xf32> to vector<16x128xf32>
    %8 = arith.addf %6, %7 : vector<16x128xf32>
    %cst_6 = arith.constant 0.000000e+00 : f32
    %9 = vector.broadcast %cst_6 : f32 to vector<16x128xf32>
    %10 = arith.subf %9, %8 : vector<16x128xf32>
    %cst_7 = arith.constant 0.000000e+00 : f32
    %11 = vector.broadcast %cst_7 : f32 to vector<16x128xf32>
    %12 = arith.minimumf %10, %11 : vector<16x128xf32>
    %13 = math.exp %12 : vector<16x128xf32>
    %cst_8 = arith.constant 9.99999997E-7 : f32
    %14 = vector.broadcast %cst_8 : f32 to vector<16x128xf32>
    %15 = arith.maximumf %13, %14 : vector<16x128xf32>
    %c0_9 = arith.constant 0 : index
    %c0_10 = arith.constant 0 : index
    %c0_11 = arith.constant 0 : index
    %16 = vector.load %arg5[%c0_9, %c0_10, %c0_11] : memref<2x16x128xf32, #tpu.memory_space<vmem>>, vector<1x16x128xf32>
    %17 = vector.shape_cast %16 : vector<1x16x128xf32> to vector<16x128xf32>
    %18 = vector.shape_cast %15 : vector<16x128xf32> to vector<1x16x128xf32>
    tpu.vector_store %arg5[%c0_9, %c0_10, %c0_11], %18 {strides = array<i32>} : memref<2x16x128xf32, #tpu.memory_space<vmem>>, vector<1x16x128xf32>,
    %c1 = arith.constant 1 : index
    %c0_12 = arith.constant 0 : index
    %c0_13 = arith.constant 0 : index
    %19 = vector.load %arg2[%c1, %c0_12, %c0_13] : memref<2x8x128xf32, #tpu.memory_space<vmem>>, vector<1x8x128xf32>
    %20 = vector.shape_cast %19 : vector<1x8x128xf32> to vector<8x128xf32>
    %21 = arith.mulf %20, %20 : vector<8x128xf32>
    %22 = tpu.concatenate %21, %20 in 0 : vector<8x128xf32>, vector<8x128xf32> -> vector<16x128xf32>
    %cst_14 = arith.constant dense<0.000000e+00> : vector<16x128xf32>
    %23 = tpu.matmul %0, %22, %cst_14 {dimension_numbers = #tpu.dot_dimension_numbers<[1], [0], [0], [1], [0, 0, 1, 1], [], []>} : vector<16x16xf32>, vector<16x128xf32>, vector<16x128xf32> -> vector<16x128xf32>
    %24 = vector.broadcast %1 : vector<16x1xf32> to vector<16x128xf32>
    %25 = arith.addf %23, %24 : vector<16x128xf32>
    %cst_15 = arith.constant 0.000000e+00 : f32
    %26 = vector.broadcast %cst_15 : f32 to vector<16x128xf32>
    %27 = arith.subf %26, %25 : vector<16x128xf32>
    %cst_16 = arith.constant 0.000000e+00 : f32
    %28 = vector.broadcast %cst_16 : f32 to vector<16x128xf32>
    %29 = arith.minimumf %27, %28 : vector<16x128xf32>
    %30 = math.exp %29 : vector<16x128xf32>
    %cst_17 = arith.constant 9.99999997E-7 : f32
    %31 = vector.broadcast %cst_17 : f32 to vector<16x128xf32>
    %32 = arith.maximumf %30, %31 : vector<16x128xf32>
    %c1_18 = arith.constant 1 : index
    %c0_19 = arith.constant 0 : index
    %c0_20 = arith.constant 0 : index
    %33 = vector.load %arg5[%c1_18, %c0_19, %c0_20] : memref<2x16x128xf32, #tpu.memory_space<vmem>>, vector<1x16x128xf32>
    %34 = vector.shape_cast %33 : vector<1x16x128xf32> to vector<16x128xf32>
    %35 = vector.shape_cast %32 : vector<16x128xf32> to vector<1x16x128xf32>
    tpu.vector_store %arg5[%c1_18, %c0_19, %c0_20], %35 {strides = array<i32>} : memref<2x16x128xf32, #tpu.memory_space<vmem>>, vector<1x16x128xf32>,
    return
  }
  func.func @transform_0(%arg0: i32, %arg1: i32) -> (i32, i32, i32) {
    %c0_i32 = arith.constant 0 : i32
    %c0_i32_0 = arith.constant 0 : i32
    return %arg0, %c0_i32, %arg1 : i32, i32, i32
  }
  func.func @transform_1(%arg0: i32, %arg1: i32) -> (i32, i32) {
    %c0_i32 = arith.constant 0 : i32
    %c0_i32_0 = arith.constant 0 : i32
    %c0_i32_1 = arith.constant 0 : i32
    return %c0_i32, %c0_i32_0 : i32, i32
  }
  func.func @transform_2(%arg0: i32, %arg1: i32) -> (i32, i32) {
    %c0_i32 = arith.constant 0 : i32
    %c0_i32_0 = arith.constant 0 : i32
    %c0_i32_1 = arith.constant 0 : i32
    return %c0_i32, %c0_i32_0 : i32, i32
  }
  func.func @transform_3(%arg0: i32, %arg1: i32) -> (i32, i32, i32) {
    %c0_i32 = arith.constant 0 : i32
    %c0_i32_0 = arith.constant 0 : i32
    return %arg0, %c0_i32, %arg1 : i32, i32, i32
  }
}

</mosaic_0001>

<bundles_post_ra>
// kernel: tpu_custom_call.1
= control target key start
LH: loop header
LB: loop body
LE: loop exit
PB: predicated region body
PF: predicated region fallthrough
CT: control target
= control target key end

     0   :  { %8 = vsyncpa [#allocation3], 0  ;;  %s1035_s0 = inlined_call_operand.hbm [shape: f32[4,8,256], index: 0, kind: input, shape index: {}]   ;;  %s1036_s1 = inlined_call_operand.vmem [shape: f32[16,16], index: 1, kind: input, shape index: {}]   ;;  %s1037_s2 = inlined_call_operand.vmem [shape: f32[16,1], index: 2, kind: input, shape index: {}]   ;;  %s1038_s3 = inlined_call_operand.hbm [shape: f32[4,16,256], index: 3, kind: output, shape index: {}]  }
   0x1   :  { %10 = vsyncpa [#allocation3 + $0x1], 0 }
   0x2   :  { %11 = vsyncpa [#allocation4], 0 }
   0x3   :  { %13 = vsyncpa [#allocation4 + $0x1], 0  ;;  %s823_s12 = smov 0   ;;  %s825_s13 = smov 0  }
   0x4   :  { %s827_s14 = smov 0   ;;  %s829_s15 = smov 0  }
   0x5   :  { %s831_s16 = smov 0   ;;  %s833_s17 = smov 0  }
   0x6   :  { %s835_s18 = smov 0   ;;  %s837_s19 = smov 0  }
   0x7 LB: > { %s514_s20 = sadd.s32 4294967295, %s792_s19   ;;  %s515_s21 = sadd.s32 4294967294, %s792_s19   ;;  %s792_s19 = sphi %s837_s19, %s19_s19   ;;  %s788_s18 = sphi %s835_s18, %s1056_s18   ;;  %s784_s17 = sphi %s833_s17, %s1055_s17   ;;  %s780_s16 = sphi %s831_s16, %s1054_s16   ;;  %s776_s15 = sphi %s829_s15, %s1053_s15   ;;  %s772_s14 = sphi %s827_s14, %s1052_s14   ;;  %s768_s13 = sphi %s825_s13, %s1051_s13   ;;  %s764_s12 = sphi %s823_s12, %s1050_s12  }
   0x8   : > { %s28_s22 = sadd.s32 1, %s784_s17  ;;  %s31_s23 = sadd.s32 1, %s788_s18 }
   0x9   : > { %p29_p0 = scmp.ge.s32.totalorder %s28_s22, 2  ;;  %s40_s24 = sadd.s32 1, %s772_s14 }
   0xa   : > { %p47_p1 = scmp.ne.s32.totalorder %s772_s14, %s768_s13  ;;  %p48_p2 = scmp.eq.s32.totalorder %s792_s19, 0 }
   0xb   : > { %s1058_s22 = smov (%p29_p0, %s28_s22), 0  ;;  %s1060_s23 = smov (!%p29_p0, %s31_s23), %s788_s18 }
   0xc   : > { %s36_s25 = ssub.s32 %s784_s17, %s1058_s22  ;;  %p876_p3 = por %p48_p2, %p47_p1 }
   0xd   : > { %p33_p4 = scmp.ge.s32.totalorder %s1060_s23, 2  ;;  %p53_p5 = scmp.ne.s32.totalorder %s768_s13, %s764_s12 }
   0xe   : > { %p54_p6 = scmp.eq.s32.totalorder %s514_s20, 0  ;;  %p121_p7 = scmp.eq.s32.totalorder %s514_s20, 3 }
   0xf   : > { %s1062_s23 = smov (%p33_p4, %s1060_s23), 0  ;;  %p127_p10 = scmp.eq.s32.totalorder %s515_s21, 3 }
  0x10   : > { %1042 = sst [smem:[#allocation8_spill]] %s1062_s23  ;;  %p884_p8 = por %p54_p6, %p53_p5 }
  0x11   : > { %p888_p9 = por %p121_p7, %p47_p1  ;;  %s35_s29 = ssub.s32 %s788_s18, %s1062_s23 }
  0x12   : > { %s37_s30 = sor.u32 %s36_s25, %s35_s29  ;;  %p894_p12 = por %p127_p10, %p53_p5 }
  0x13   : > { %s1044_s28 = scalar_select %p888_p9, 1, 0 }
  0x14   : > { %p38_p11 = scmp.eq.s32.totalorder %s37_s30, 0  ;;  %p582_p13 = scmp.lt.s32.totalorder %s792_s19, 4 }
  0x15   : > { %s1045_s4 = scalar_select %p894_p12, 1, 0 }
  0x16   : > { %s153_s5 = sand.u32 1, %s772_s14   ;;  %s538_s8 = sshll.u32 %s788_s18, 2 }
  0x17   : > { %s901_s6 = scalar_select %p38_p11, %s772_s14, %s40_s24  }
  0x18   : > { %s518_s7 = sshll.u32 %s153_s5, 4  ;;  %s163_s9 = sadd.s32 %s784_s17, %s538_s8 }
  0x19   : > { %s157_s10 = scalar_lea.vmem [#allocation2], %s518_s7  ;;  %s521_s20 = sshll.u32 %s163_s9, 7 }
  0x1a   : > { %s166_s11 = sshll.u32 %s157_s10, 4  ;;  %s910_s25 = scalar_lea.hbm %s1035_s0, %s521_s20  ;;  %s905_s11 = int_to_ptr.vmem [resolvable:$true] %s166_s11 }
  0x1b   : > { %p914_p0 = pnand %p582_p13, %p876_p3  ;;  %s918_s29 = scalar_lea.sflag [#allocation3], %s153_s5 }
  0x1c   : > { %s664_s30 = scalar_lea.hbm %s910_s25, 256  ;;  %s669_s7 = scalar_lea.hbm %s1035_s0, 1024 }
  0x1d   : > { %p665_p1 = scmp.ne.s32.totalorder %s910_s25, %s664_s30  ;;  %p666_p2 = pneg %p914_p0 }
  0x1e   : > { %p670_p3 = scmp.lt.u32.totalorder %s910_s25, %s1035_s0  ;;  %p671_p6 = scmp.lt.u32.totalorder %s669_s7, %s664_s30 }
  0x1f   : > { %p667_p4 = pnand %p666_p2, %p665_p1  ;;  %p673_p10 = scmp.lt.u32.totalorder %s664_s30, %s910_s25 }
  0x20   : > { %p672_p7 = por %p671_p6, %p670_p3 }
  0x21   : > { %p668_p5 = pneg %p667_p4 }
  0x22   : > { %p674_p11 = por %p673_p10, %p672_p7 }
  0x24   : > { %p675_p13 = pnand %p674_p11, %p668_p5 }
  0x26   : > { %678 = shalt.err (!%p675_p13)
}
  0x27   : > { %s679_s5 = scalar_lea.vmem %s905_s11, 256  ;;  %s794_s10 = smov [#allocation2]  }
  0x28   : > { %p680_p1 = scmp.ne.s32.totalorder %s905_s11, %s679_s5  ;;  %s684_s20 = sshll.u32 %s794_s10, 4  ;;  %s685_s20 = int_to_ptr.vmem [resolvable:$false] %s684_s20 }
  0x29   : > { %s686_s21 = scalar_lea.vmem %s685_s20, 512  ;;  %p687_p9 = scmp.lt.s32.totalorder %s905_s11, %s685_s20 }
  0x2a   : > { %p682_p4 = pnand %p680_p1, %p666_p2  ;;  %p688_p3 = scmp.lt.s32.totalorder %s686_s21, %s679_s5 }
  0x2c   : > { %p683_p12 = pneg %p682_p4  ;;  %p689_p6 = por %p688_p3, %p687_p9 }
  0x2e   : > { %p690_p7 = pnand %p689_p6, %p683_p12 }
  0x30   : > { %693 = shalt.err (!%p690_p7)
}
  0x31   : > { %s795_s30 = smov 256   ;;  %s796_s23 = smov 128  }
  0x32   : > { %s797_s26 = smov 8   ;;  %p522_p2 = scmp.ge.s32.totalorder %s792_s19, 1 }
  0x33   : > { %577 = dma.hbm_to_vmem [thread:$0]  (!%p914_p0), %s910_s25, 256, %s905_s11, %s918_s29, %s795_s30, %s796_s23, %s797_s26  }
  0x34   : > { %p174_p5 = scmp.lt.s32.totalorder %s792_s19, 5 }
  0x36   : > { %p175_p10 = pnand %p522_p2, %p174_p5 }
  0x37   : > { %s949_s7 = sand.u32 (!%p175_p10), 1, %s768_s13  }
  0x38   : > { %178 = sbr.rel (%p175_p10) target bundleno = 325 (0x145), region = 32  ;;  %s523_s8 = sshll.u32 (!%p175_p10), %s949_s7, 4 }
  0x39   : > { %s181_s9 = scalar_lea.sflag (!%p175_p10), [#allocation3], %s949_s7  ;;  %s184_s5 = scalar_lea.vmem (!%p175_p10), [#allocation2], %s523_s8 }
  0x3f   : > { %755 = dma.done.wait (%p884_p8), %s181_s9, 256  }
  0x40   : > { %757 = vsyncadd (%p884_p8), %s181_s9, 4294967040  ;;  %v798_v0 = vmov 0   ;;  %vm225_vm0 = vcmask 130048   ;;  %v213_v1 = vld [vmem:[%s184_s5] sm:$0xff]  ;;  %v527_v2 = vld [vmem:[%s184_s5 + $0x8] sm:$0xff]  ;;  %s524_s30 = sshll.u32 %s949_s7, 5 }
  0x41   : > { %655 = vset.pattern.permute.xlu0 %v798_v0  ;;  %v209_v3 = vld [vmem:[%s1036_s1] sm:$0xff]  ;;  %v214_v4 = vmul.f32 %v213_v1, %v213_v1  ;;  %v321_v5 = vmul.f32 %v527_v2, %v527_v2  ;;  %v212_v9 = vld [vmem:[%s1037_s2 + $0x8] sm:$0xff]  ;;  %s539_s23 = sshll.u32 %s780_s16, 3  ;;  %s206_s8 = scalar_lea.vmem [#allocation5], %s524_s30 }
  0x42   : > { %552 = vmatprep.mubr.msk.f32.mxu0 %vm225_vm0, %v209_v3  ;;  %559 = vmatprep.mubr.msk.f32.mxu1 %vm225_vm0, %v209_v3  ;;  %v211_v6 = vld [vmem:[%s1037_s2] sm:$0xff]  ;;  %v210_v10 = vld [vmem:[%s1036_s1 + $0x8] sm:$0xff]  ;;  %s423_s26 = sadd.s32 %s776_s15, %s539_s23  ;;  %s426_s9 = sshll.u32 %s206_s8, 4  ;;  %s976_s9 = int_to_ptr.vmem [resolvable:$true] %s426_s9 }
  0x43   : > { %217 = vperm.xlu0 %655, %v211_v6   ;;  %v562_v7 = vpack.c.bf16 %v213_v1, %v214_v4  ;;  %v566_v8 = vpack.c.bf16 %v527_v2, %v321_v5  ;;  %s535_s5 = sshll.u32 %s423_s26, 7  ;;  %s411_s25 = scalar_lea.sflag [#allocation4], %s949_s7 }
  0x44   : > { %s981_s11 = scalar_lea.hbm %s1038_s3, %s535_s5  ;;  %s694_s24 = scalar_lea.vmem %s976_s9, 512 }
  0x45   : > { %563 = vmatprep.subr.bf16.mxu0 %v562_v7  ;;  %567 = vmatprep.subr.bf16.mxu1 %v566_v8  ;;  %p695_p8 = scmp.ne.s32.totalorder %s976_s9, %s694_s24  ;;  %p1047_p9 = scmp.ne.s32.totalorder %s1044_s28, 0 }
  0x46   : > { %565 = vmatpush3.bf16.msra.mxu0 %v562_v7  ;;  %569 = vmatpush3.bf16.msra.mxu1 %v566_v8  ;;  %s799_s29 = smov [#allocation5]  }
  0x47   : > { %222 = vperm.xlu0 %655, %v212_v9   ;;  %p696_p12 = pnand %p695_p8, %p1047_p9  ;;  %s698_s27 = sshll.u32 %s799_s29, 4  ;;  %s699_s27 = int_to_ptr.vmem [resolvable:$false] %s698_s27 }
  0x48   : > { %s700_s10 = scalar_lea.vmem %s699_s27, 1024  ;;  %p701_p11 = scmp.lt.s32.totalorder %s976_s9, %s699_s27 }
  0x49   : > { %553 = vmatmul.mubr.msk.f32.vlgmr.msra.gmra.mrb[0].mxu0 %vm225_vm0, %v210_v10  ;;  %560 = vmatmul.mubr.msk.f32.vlgmr.msra.gmra.mrb[0].mxu1 %vm225_vm0, %v210_v10  ;;  %p697_p0 = pneg %p696_p12  ;;  %p702_p13 = scmp.lt.s32.totalorder %s700_s10, %s694_s24 }
  0x4b   : > { %p703_p1 = por %p702_p13, %p701_p11 }
  0x4d   : > { %p704_p4 = pnand %p703_p1, %p697_p0 }
  0xc2   : > { %v218_v11 = vpop.permute.xlu0 %217 }
  0xc6   : > { %v223_v12 = vpop.permute.xlu0 %222 }
 0x11c   : > { %v554_v13 = vpop.f32.mrb[0].mxu0  ;;  %v561_v14 = vpop.f32.mrb[0].mxu1 }
 0x11d   : > { %v304_v15 = vadd.f32 %v554_v13, %v223_v12  ;;  %v394_v16 = vadd.f32 %v561_v14, %v223_v12  ;;  %v298_v17 = vpop.f32.mrb[1].mxu0  ;;  %v388_v18 = vpop.f32.mrb[1].mxu1 }
 0x11e   : > { %v299_v19 = vadd.f32 %v298_v17, %v218_v11  ;;  %v389_v20 = vadd.f32 %v388_v18, %v218_v11 }
 0x11f   : > { %v308_v21 = vsub.f32 0.0, %v304_v15  ;;  %v398_v22 = vsub.f32 0.0, %v394_v16 }
 0x120   : > { %v307_v23 = vsub.f32 0.0, %v299_v19  ;;  %v397_v24 = vsub.f32 0.0, %v389_v20 }
 0x121   : > { %v310_v25 = vmin.f32 %v308_v21, 0.0  ;;  %v400_v26 = vmin.f32 %v398_v22, 0.0 }
 0x122   : > { %v309_v27 = vmin.f32 %v307_v23, 0.0  ;;  %v399_v28 = vmin.f32 %v397_v24, 0.0 }
 0x123   : > { %v313_v29 = vmul.f32 1.442695, %v310_v25  ;;  %v403_v30 = vmul.f32 1.442695, %v400_v26 }
 0x124   : > { %v311_v31 = vmul.f32 1.442695, %v309_v27  ;;  %v401_v32 = vmul.f32 1.442695, %v399_v28 }
 0x125   : > { %656 = vpow2.f32 %v313_v29 }
 0x126   : > { %658 = vpow2.f32 %v403_v30 }
 0x127   : > { %660 = vpow2.f32 %v311_v31 }
 0x128   : > { %662 = vpow2.f32 %v401_v32 }
 0x12f   : > { %v657_v33 = vpop.eup %656 }
 0x130   : > { %v659_v34 = vpop.eup %658  ;;  %v316_v35 = vmax.f32 %v657_v33, 1e-06 }
 0x131   : > { %v661_v36 = vpop.eup %660  ;;  %v406_v37 = vmax.f32 %v659_v34, 1e-06 }
 0x132   : > { %v663_v38 = vpop.eup %662  ;;  %318 = vst [vmem:[%s206_s8 + $0x8] sm:$0xff] %v316_v35  ;;  %v315_v39 = vmax.f32 %v661_v36, 1e-06 }
 0x133   : > { %531 = vst [vmem:[%s206_s8 + $0x18] sm:$0xff] %v406_v37  ;;  %v405_v40 = vmax.f32 %v663_v38, 1e-06 }
 0x134   : > { %317 = vst [vmem:[%s206_s8] sm:$0xff] %v315_v39 }
 0x135   : > { %530 = vst [vmem:[%s206_s8 + $0x10] sm:$0xff] %v405_v40 }
 0x136   : > { %707 = shalt.err (!%p704_p4)
}
 0x137   : > { %s708_s20 = scalar_lea.hbm %s981_s11, 512  ;;  %s712_s23 = scalar_lea.hbm %s1038_s3, 2048 }
 0x138   : > { %p709_p3 = scmp.ne.s32.totalorder %s981_s11, %s708_s20  ;;  %p713_p2 = scmp.lt.u32.totalorder %s981_s11, %s1038_s3 }
 0x139   : > { %p714_p5 = scmp.lt.u32.totalorder %s712_s23, %s708_s20  ;;  %p716_p8 = scmp.lt.u32.totalorder %s708_s20, %s981_s11 }
 0x13a   : > { %p710_p6 = pnand %p709_p3, %p1047_p9 }
 0x13b   : > { %p715_p10 = por %p714_p5, %p713_p2 }
 0x13c   : > { %p711_p7 = pneg %p710_p6 }
 0x13d   : > { %p717_p12 = por %p716_p8, %p715_p10 }
 0x13f   : > { %p718_p0 = pnand %p717_p12, %p711_p7 }
 0x141   : > { %721 = shalt.err (!%p718_p0)
}
 0x142   : > { %s800_s5 = smov 128   ;;  %s801_s16 = smov 256  }
 0x143   : > { %s802_s15 = smov 8  }
 0x144   : > { %572 = dma.vmem_to_hbm [thread:$0]  (%p1047_p9), %s976_s9, 512, %s981_s11, %s411_s25, %s800_s5, %s801_s16, %s802_s15  }
 0x145 PF: > { %p583_p11 = scmp.ge.s32.totalorder %s792_s19, 2  ;;  %s441_s24 = sand.u32 1, %s764_s12  }
 0x146   : > { %p1048_p13 = scmp.ne.s32.totalorder %s1045_s4, 0  ;;  %s442_s29 = scalar_lea.sflag [#allocation4], %s441_s24 }
 0x148   : > { %p579_p1 = pnand %p583_p11, %p1048_p13 }
 0x14a   : > { %759 = dma.done.wait (!%p579_p1), %s442_s29, 512  }
 0x14b   : > { %761 = vsyncadd (!%p579_p1), %s442_s29, 4294966784  ;;  %s19_s19 = sadd.s32 1, %s792_s19   ;;  %s1049_s28 = sld [smem:[#allocation8_spill]] }
 0x14c   : > { %p16_p4 = scmp.ge.s32.totalorder %s19_s19, 6   ;;  %s1050_s12 = smov %s768_s13 }
 0x14d   : > { %s1051_s13 = smov %s772_s14  ;;  %s1052_s14 = smov %s901_s6 }
 0x14e   : > { %s1053_s15 = smov %s784_s17  ;;  %s1054_s16 = smov %s788_s18 }
 0x14f   : > { %s1055_s17 = smov %s1058_s22  ;;  %18 = sbr.rel (!%p16_p4) target bundleno = 7 (0x7), region = 79 }
 0x151   : > { %s1056_s18 = smov %s1049_s28 }
 0x156   :  { %447 = vsyncpa [#allocation3], 1 }
 0x157   :  { %449 = vsyncpa [#allocation3 + $0x1], 1 }
 0x158   :  { %450 = vsyncpa [#allocation4], 1 }
 0x159   :  { %452 = vsyncpa [#allocation4 + $0x1], 1 }

</bundles_post_ra>
